<compile_context>
chip_gen: v7x
topology: tpu7x:2x2x1
jax: 0.10.0
libtpu: 0.0.40
codegen_flags: <defaults>
</compile_context>

<pallas_src>
import jax
import jax.numpy as jnp
from jax.experimental import pallas as pl
from jax.experimental.pallas import tpu as pltpu

INPUT_DIM = 8
MEDIUM_DIMS = [6, 4]
OUTPUT_DIM = 1

# Packed-parameter slab layout (f32, (24, 16)):
#   rows  0: 6, cols 0:8 -> W1 (6, 8)    rows  0: 6, col 8 -> b1
#   rows  8:12, cols 0:6 -> W2 (4, 6)    rows  8:12, col 8 -> b2
#   rows 16:17, cols 0:4 -> W3 (1, 4)    rows 16:17, col 8 -> b3
SLAB_SHAPE = (24, 16)


def mlp_kernel(x_ref, slab_ref, o_ref):
    # x: (8, tile_n) bf16 in VMEM; upcast once, keep all arithmetic in f32.
    x = x_ref[...].astype(jnp.float32)

    w1 = slab_ref[0:6, 0:8]                 # (6, 8)
    b1 = slab_ref[0:6, 8:9]                 # (6, 1) -> broadcast over lanes
    h1 = jax.nn.sigmoid(jnp.dot(w1, x, preferred_element_type=jnp.float32) + b1)   # (6, tile_n)

    w2 = slab_ref[8:12, 0:6]                # (4, 6)
    b2 = slab_ref[8:12, 8:9]                # (4, 1)
    h2 = jax.nn.sigmoid(jnp.dot(w2, h1, preferred_element_type=jnp.float32) + b2)  # (4, tile_n)

    w3 = slab_ref[16:17, 0:4]               # (1, 4)
    b3 = slab_ref[16:17, 8:9]               # (1, 1)
    y = jax.nn.sigmoid(jnp.dot(w3, h2, preferred_element_type=jnp.float32) + b3)   # (1, tile_n)

    o_ref[...] = y.astype(o_ref.dtype)      # lane-dense, unmasked store


def pack_params(params):
    """Fold the six weight/bias arrays (torch orientation) into one small slab."""
    w1, b1, w2, b2, w3, b3 = params          # w: (out, in), b: (out,)
    slab = jnp.zeros(SLAB_SHAPE, jnp.float32)
    slab = slab.at[0:6, 0:8].set(w1).at[0:6, 8:9].set(b1.reshape(-1, 1))
    slab = slab.at[8:12, 0:6].set(w2).at[8:12, 8:9].set(b2.reshape(-1, 1))
    slab = slab.at[16:17, 0:4].set(w3).at[16:17, 8:9].set(b3.reshape(-1, 1))
    return slab


def multi_dim_forward(x, params, *, max_tile_n=4096):
    """x: (N, 8) batch-major (torch layout), f32. Returns (N, 1) f32."""
    n = x.shape[0]
    slab = pack_params(params)

    # Tile: multiple of 128 (lane-dense), as large as max_tile_n, capped at ceil(N/2)
    # rounded up to 128 so the grid has >= 2 steps whenever the batch allows.
    half = -(-n // 2)
    tile = min(max_tile_n, max(128, ((half + 127) // 128) * 128))
    n_pad = -(-n // tile) * tile

    # Wrapper-side layout plumbing (not hoisted compute): feature-major + bf16 + pad.
    x_t = jnp.pad(x.T.astype(jnp.bfloat16), ((0, 0), (0, n_pad - n)))   # (8, n_pad)

    out_t = pl.pallas_call(
        mlp_kernel,
        out_shape=jax.ShapeDtypeStruct((OUTPUT_DIM, n_pad), jnp.float32),
        grid_spec=pltpu.PrefetchScalarGridSpec(
            num_scalar_prefetch=0,
            grid=(n_pad // tile,),
            in_specs=[
                pl.BlockSpec((INPUT_DIM, tile), lambda i: (0, i)),
                pl.BlockSpec(SLAB_SHAPE, lambda i: (0, 0)),   # constant block: fetched once
            ],
            out_specs=pl.BlockSpec((OUTPUT_DIM, tile), lambda i: (0, i)),
        ),
        compiler_params=pltpu.CompilerParams(
            dimension_semantics=("parallel",),
        ),
    )(x_t, slab)

    return out_t[:, :n].T                                     # back to (N, 1)


def init_params(key):
    """Deterministic init mimicking torch.nn.Linear's U(-1/sqrt(fan_in), ...)."""
    dims = [INPUT_DIM, MEDIUM_DIMS[0], MEDIUM_DIMS[1], OUTPUT_DIM]
    params = []
    for d_in, d_out in zip(dims[:-1], dims[1:]):
        key, kw, kb = jax.random.split(key, 3)
        bound = 1.0 / jnp.sqrt(jnp.float32(d_in))
        w = jax.random.uniform(kw, (d_out, d_in), jnp.float32, -bound, bound)
        b = jax.random.uniform(kb, (d_out,), jnp.float32, -bound, bound)
        params.extend([w, b])
    return tuple(params)


def reference_forward(x, params):
    w1, b1, w2, b2, w3, b3 = params
    h = jax.nn.sigmoid(x @ w1.T + b1)
    h = jax.nn.sigmoid(h @ w2.T + b2)
    return jax.nn.sigmoid(h @ w3.T + b3)


if __name__ == "__main__":
    key = jax.random.PRNGKey(0)
    k_x, k_p = jax.random.split(key)

    # TODO(synk): original module loads ./datasets/diabetes.csv.gz; replaced with
    # synthetic 8-feature rows of the same shape (442 x 8) since no file I/O is allowed.
    N = 442  # deliberately NOT a multiple of the tile size -> exercises the padded tail
    x = jax.random.normal(k_x, (N, INPUT_DIM), jnp.float32)
    params = init_params(k_p)

    out = jax.block_until_ready(multi_dim_forward(x, params))

    # Reference on the same bf16-rounded inputs the kernel consumes.
    x_q = x.astype(jnp.bfloat16).astype(jnp.float32)
    ref = reference_forward(x_q, params)

    assert out.shape == (N, OUTPUT_DIM)
    assert jnp.allclose(out, ref, atol=2e-3, rtol=2e-3), float(jnp.max(jnp.abs(out - ref)))

    print("KERNEL_OK")
</pallas_src>

<mosaic_0001>
module attributes {stable_mosaic.version = 11 : i64} {
  func.func @mlp_kernel(%arg0: i32, %arg1: memref<8x256xbf16, #tpu.memory_space<vmem>>, %arg2: memref<24x16xf32, #tpu.memory_space<vmem>>, %arg3: memref<1x256xf32, #tpu.memory_space<vmem>>) attributes {dimension_semantics = [#tpu.dimension_semantics<parallel>], iteration_bounds = array<i64: 2>, scalar_prefetch = 0 : i64, scratch_operands = 0 : i64, tpu.core_type = #tpu.core_type<tc>, window_params = [{transform_indices = @transform_0, window_bounds = array<i64: 8, 256>}, {pipeline_mode = #tpu.pipeline_mode<synchronous>, transform_indices = @transform_1, window_bounds = array<i64: 24, 16>}, {transform_indices = @transform_2, window_bounds = array<i64: 1, 256>}]} {
    %c0 = arith.constant 0 : index
    %c0_0 = arith.constant 0 : index
    %0 = vector.load %arg1[%c0, %c0_0] : memref<8x256xbf16, #tpu.memory_space<vmem>>, vector<8x256xbf16>
    %1 = arith.extf %0 : vector<8x256xbf16> to vector<8x256xf32>
    %c0_1 = arith.constant 0 : index
    %c0_2 = arith.constant 0 : index
    %2 = vector.load %arg2[%c0_1, %c0_2] : memref<24x16xf32, #tpu.memory_space<vmem>>, vector<6x8xf32>
    %c0_3 = arith.constant 0 : index
    %c8 = arith.constant 8 : index
    %3 = vector.load %arg2[%c0_3, %c8] : memref<24x16xf32, #tpu.memory_space<vmem>>, vector<6x1xf32>
    %cst = arith.constant dense<0.000000e+00> : vector<6x256xf32>
    %4 = tpu.matmul %2, %1, %cst {dimension_numbers = #tpu.dot_dimension_numbers<[1], [0], [0], [1], [0, 0, 1, 1], [], []>} : vector<6x8xf32>, vector<8x256xf32>, vector<6x256xf32> -> vector<6x256xf32>
    %5 = vector.broadcast %3 : vector<6x1xf32> to vector<6x256xf32>
    %6 = arith.addf %4, %5 : vector<6x256xf32>
    %7 = arith.negf %6 : vector<6x256xf32>
    %8 = math.exp %7 : vector<6x256xf32>
    %cst_4 = arith.constant 1.000000e+00 : f32
    %9 = vector.broadcast %cst_4 : f32 to vector<6x256xf32>
    %10 = arith.addf %9, %8 : vector<6x256xf32>
    %11 = arith.divf %9, %10 : vector<6x256xf32>
    %c8_5 = arith.constant 8 : index
    %c0_6 = arith.constant 0 : index
    %12 = vector.load %arg2[%c8_5, %c0_6] : memref<24x16xf32, #tpu.memory_space<vmem>>, vector<4x6xf32>
    %c8_7 = arith.constant 8 : index
    %c8_8 = arith.constant 8 : index
    %13 = vector.load %arg2[%c8_7, %c8_8] : memref<24x16xf32, #tpu.memory_space<vmem>>, vector<4x1xf32>
    %cst_9 = arith.constant dense<0.000000e+00> : vector<4x256xf32>
    %14 = tpu.matmul %12, %11, %cst_9 {dimension_numbers = #tpu.dot_dimension_numbers<[1], [0], [0], [1], [0, 0, 1, 1], [], []>} : vector<4x6xf32>, vector<6x256xf32>, vector<4x256xf32> -> vector<4x256xf32>
    %15 = vector.broadcast %13 : vector<4x1xf32> to vector<4x256xf32>
    %16 = arith.addf %14, %15 : vector<4x256xf32>
    %17 = arith.negf %16 : vector<4x256xf32>
    %18 = math.exp %17 : vector<4x256xf32>
    %cst_10 = arith.constant 1.000000e+00 : f32
    %19 = vector.broadcast %cst_10 : f32 to vector<4x256xf32>
    %20 = arith.addf %19, %18 : vector<4x256xf32>
    %21 = arith.divf %19, %20 : vector<4x256xf32>
    %c16 = arith.constant 16 : index
    %c0_11 = arith.constant 0 : index
    %22 = vector.load %arg2[%c16, %c0_11] : memref<24x16xf32, #tpu.memory_space<vmem>>, vector<1x4xf32>
    %c16_12 = arith.constant 16 : index
    %c8_13 = arith.constant 8 : index
    %23 = vector.load %arg2[%c16_12, %c8_13] : memref<24x16xf32, #tpu.memory_space<vmem>>, vector<1x1xf32>
    %cst_14 = arith.constant dense<0.000000e+00> : vector<1x256xf32>
    %24 = tpu.matmul %22, %21, %cst_14 {dimension_numbers = #tpu.dot_dimension_numbers<[1], [0], [0], [1], [0, 0, 1, 1], [], []>} : vector<1x4xf32>, vector<4x256xf32>, vector<1x256xf32> -> vector<1x256xf32>
    %25 = vector.broadcast %23 : vector<1x1xf32> to vector<1x256xf32>
    %26 = arith.addf %24, %25 : vector<1x256xf32>
    %27 = arith.negf %26 : vector<1x256xf32>
    %28 = math.exp %27 : vector<1x256xf32>
    %cst_15 = arith.constant 1.000000e+00 : f32
    %29 = vector.broadcast %cst_15 : f32 to vector<1x256xf32>
    %30 = arith.addf %29, %28 : vector<1x256xf32>
    %31 = arith.divf %29, %30 : vector<1x256xf32>
    %c0_16 = arith.constant 0 : index
    %c0_17 = arith.constant 0 : index
    %32 = vector.load %arg3[%c0_16, %c0_17] : memref<1x256xf32, #tpu.memory_space<vmem>>, vector<1x256xf32>
    tpu.vector_store %arg3[%c0_16, %c0_17], %31 {strides = array<i32>} : memref<1x256xf32, #tpu.memory_space<vmem>>, vector<1x256xf32>,
    return
  }
  func.func @transform_0(%arg0: i32) -> (i32, i32) {
    %c0_i32 = arith.constant 0 : i32
    %c0_i32_0 = arith.constant 0 : i32
    return %c0_i32, %arg0 : i32, i32
  }
  func.func @transform_1(%arg0: i32) -> (i32, i32) {
    %c0_i32 = arith.constant 0 : i32
    %c0_i32_0 = arith.constant 0 : i32
    %c0_i32_1 = arith.constant 0 : i32
    return %c0_i32, %c0_i32_0 : i32, i32
  }
  func.func @transform_2(%arg0: i32) -> (i32, i32) {
    %c0_i32 = arith.constant 0 : i32
    %c0_i32_0 = arith.constant 0 : i32
    return %c0_i32, %arg0 : i32, i32
  }
}

</mosaic_0001>

<bundles_post_ra>
// kernel: tpu_custom_call.1
= control target key start
LH: loop header
LB: loop body
LE: loop exit
PB: predicated region body
PF: predicated region fallthrough
CT: control target
= control target key end

     0   :  { %7 = vsyncpa [#allocation3], 0  ;;  %s820_s0 = inlined_call_operand.vmem [shape: bf16[8,512], index: 0, kind: input, shape index: {}]   ;;  %s821_s1 = inlined_call_operand.vmem [shape: f32[24,16], index: 1, kind: input, shape index: {}]   ;;  %s822_s2 = inlined_call_operand.hbm [shape: f32[1,512], index: 2, kind: output, shape index: {}]  }
   0x1   :  { %9 = vsyncpa [#allocation3 + $0x1], 0  ;;  %s712_s9 = smov 0   ;;  %s714_s10 = smov 0  }
   0x2   :  { %s716_s11 = smov 0   ;;  %s718_s12 = smov 0  }
   0x3 LB: > { %s733_s13 = sadd.s32 4294967295, %s691_s12   ;;  %s535_s14 = sadd.s32 4294967294, %s691_s12   ;;  %s691_s12 = sphi %s718_s12, %s828_s12   ;;  %s687_s11 = sphi %s716_s11, %s827_s11   ;;  %s683_s10 = sphi %s714_s10, %s826_s10   ;;  %s679_s9 = sphi %s712_s9, %s825_s9  }
   0x4   : > { %s737_s15 = sadd.s32 1, %s691_s12   ;;  %s69_s16 = sadd.s32 1, %s687_s11 }
   0x5   : > { %s66_s17 = ssub.s32 %s691_s12, %s737_s15  ;;  %p79_p0 = scmp.ne.s32.totalorder %s687_s11, %s683_s10 }
   0x6   : > { %p67_p1 = scmp.eq.s32.totalorder %s66_s17, 0  ;;  %p80_p2 = scmp.eq.s32.totalorder %s733_s13, 1 }
   0x7   : > { %p85_p3 = scmp.ne.s32.totalorder %s683_s10, %s679_s9  ;;  %p86_p4 = scmp.eq.s32.totalorder %s535_s14, 1 }
   0x8   : > { %s748_s18 = scalar_select %p67_p1, %s687_s11, %s69_s16  }
   0x9   : > { %p750_p5 = por %p80_p2, %p79_p0  ;;  %p754_p6 = por %p86_p4, %p85_p3 }
   0xa   : > { %p538_p7 = scmp.ge.s32.totalorder %s691_s12, 1  ;;  %p116_p8 = scmp.lt.s32.totalorder %s691_s12, 3 }
   0xc   : > { %p117_p9 = pnand %p538_p7, %p116_p8 }
   0xd   : > { %s540_s21 = sshll.u32 (!%p117_p9), %s733_s13, 1  ;;  %v693_v0 = vmov (!%p117_p9), 0.0   ;;  %v148_v1 = vld [vmem:[%s821_s1] sm:$0x3f] (!%p117_p9)  ;;  %v694_v2 = vmov (!%p117_p9), 8   ;;  %vm154_vm0 = vcmask (!%p117_p9), 64512   ;;  %v444_v47 = vlaneseq (!%p117_p9) }
   0xe   : > { %120 = sbr.rel (%p117_p9) target bundleno = 776 (0x308), region = 28  ;;  %p139_p10 = scmp.lt.s32.totalorder (!%p117_p9), %s540_s21, 3  ;;  %221 = vmatprep.mubr.f32.mxu0 (!%p117_p9), %v693_v0  ;;  %603 = vset.pattern.permute.xlu0 (!%p117_p9), %v694_v2  ;;  %v240_v3 = vld [vmem:[%s821_s1 + $0x8] sm:$0xf] (!%p117_p9)  ;;  %vm249_vm1 = vcmask (!%p117_p9), 1045504   ;;  %vm246_vm2 = vcmask (!%p117_p9), 48128  }
   0xf   : > { %151 = vperm.xlu0 (!%p117_p9), %603, %v148_v1   ;;  %320 = vmatprep.mubr.f32.mxu1 (!%p117_p9), %v693_v0  ;;  %v339_v20 = vld [vmem:[%s821_s1 + $0x10] sm:$0x1] (!%p117_p9)  ;;  %vm348_vm3 = vcmask (!%p117_p9), 1043456   ;;  %vm345_vm4 = vcmask (!%p117_p9), 31744   ;;  %v695_v45 = vmov (!%p117_p9), 1966171168  }
  0x10   : > { %604 = vset.pattern.permute.xlu1 (!%p117_p9), %v694_v2  ;;  %v442_v46 = vunpack.c.l.s4 (!%p117_p9), %v695_v45  ;;  %s135_s4 = sand.u32 (!%p117_p9), 1, %s683_s10   ;;  %v445_v49 = vshrl.u32 (!%p117_p9), %v444_v47, 7  ;;  %s560_s6 = sshll.u32 (!%p117_p9), %s733_s13, 5  ;;  %vm458_vm5 = vcmp.lt.s32.totalorder (!%p117_p9), %v444_v47, 256 }
  0x11   : > { %342 = vperm.xlu1 (!%p117_p9), %604, %v339_v20   ;;  %s539_s5 = sshll.u32 (!%p117_p9), %s135_s4, 1  ;;  %s778_s17 = scalar_lea.hbm (!%p117_p9), %s822_s2, %s560_s6 }
  0x12   : > { %v443_v48 = vunpack.c.0.s8 (!%p117_p9), %v442_v46  ;;  %s137_s7 = scalar_lea.vmem (!%p117_p9), [#allocation2], %s539_s5  ;;  %s696_s13 = smov (!%p117_p9), [#allocation2]  }
  0x13   : > { %243 = vperm.xlu0 (!%p117_p9), %603, %v240_v3   ;;  %s476_s8 = sshll.u32 (!%p117_p9), %s137_s7, 4  ;;  %s633_s23 = sshll.u32 (!%p117_p9), %s696_s13, 4  ;;  %s780_s8 = int_to_ptr.vmem [resolvable:$true] %s476_s8  ;;  %s634_s23 = int_to_ptr.vmem [resolvable:$false] %s633_s23 }
  0x14   : > { %v446_v51 = vsub.s32 (!%p117_p9), %v443_v48, %v445_v49  ;;  %s629_s22 = scalar_lea.vmem (!%p117_p9), %s780_s8, 32  ;;  %s635_s24 = scalar_lea.vmem (!%p117_p9), %s634_s23, 64 }
  0x15   : > { %s830_s21 = smov (!%p139_p10, %s540_s21), 3  ;;  %p630_p11 = scmp.ne.s32.totalorder %s780_s8, %s629_s22 }
  0x16   : > { %s541_s26 = sshll.u32 %s830_s21, 2  ;;  %s462_s21 = scalar_lea.sflag [#allocation3], %s135_s4 }
  0x17   : > { %s142_s29 = scalar_lea.vmem %s820_s0, %s541_s26  ;;  %p631_p12 = pnand %p630_p11, %p750_p5 }
  0x18   : > { %v145_v4 = vld [vmem:[%s142_s29] sm:$0xff]  ;;  %p636_p0 = scmp.lt.s32.totalorder %s780_s8, %s634_s23  ;;  %p637_p1 = scmp.lt.s32.totalorder %s635_s24, %s629_s22 }
  0x19   : > { %v147_v5 = vunpack.c.h.bf16 %v145_v4  ;;  %v146_v6 = vunpack.c.l.bf16 %v145_v4  ;;  %p632_p13 = pneg %p631_p12 }
  0x1a   : > { %p638_p2 = por %p637_p1, %p636_p0 }
  0x1b   : > { %157 = vmatprep.subr.mxu0 %v147_v5 }
  0x1c   : > { %158 = vmatpush1.msra.mxu0 %v146_v6  ;;  %p639_p3 = pnand %p638_p2, %p632_p13 }
  0x1d   : > { %542 = vmatmul.mubr.msk.f32.vlgmr.msra.gmra.mrb[0].mxu0 %vm154_vm0, %v148_v1 }
  0x1e   : > { %419 = vmatprep.mubr.f32.mxu0 %v693_v0 }
  0x8e   : > { %v152_v7 = vpop.permute.xlu0 %151 }
  0x90   : > { %v343_v34 = vpop.permute.xlu1 %342 }
  0x92   : > { %v244_v21 = vpop.permute.xlu0 %243 }
  0xf0   : > { %v223_v8 = vpop.f32.mrb[0].mxu0 }
  0xf1   : > { %v224_v9 = vadd.f32 %v223_v8, %v152_v7  ;;  %v225_v10 = vpop.f32.mrb[1].mxu0 }
  0xf2   : > { %v226_v11 = vadd.f32 %v225_v10, %v152_v7 }
  0xf3   : > { %v543_v12 = vmul.f32 -1.442695, %v224_v9 }
  0xf4   : > { %v544_v13 = vmul.f32 -1.442695, %v226_v11 }
  0xf5   : > { %605 = vpow2.f32 %v543_v12 }
  0xf6   : > { %607 = vpow2.f32 %v544_v13 }
  0xff   : > { %v606_v14 = vpop.eup %605 }
 0x100   : > { %v608_v15 = vpop.eup %607  ;;  %v234_v16 = vadd.f32 1.0, %v606_v14 }
 0x101   : > { %v235_v17 = vadd.f32 1.0, %v608_v15 }
 0x103   : > { %609 = vrcp.f32 %v235_v17 }
 0x104   : > { %611 = vrcp.f32 %v234_v16 }
 0x10d   : > { %v610_v18 = vpop.eup %609 }
 0x10e   : > { %v612_v19 = vpop.eup %611  ;;  %545 = vmatprep.subr.msk.mxu1 %vm249_vm1, %v610_v18 }
 0x10f   : > { %546 = vmatpush1.msk.msra.mxu1 %vm249_vm1, %v612_v19 }
 0x110   : > { %547 = vmatmul.mubr.msk.f32.vlgmr.msra.gmra.mrb[0].mxu1 %vm246_vm2, %v240_v3 }
 0x1e3   : > { %v322_v22 = vpop.f32.mrb[0].mxu1 }
 0x1e4   : > { %v323_v23 = vadd.f32 %v322_v22, %v244_v21  ;;  %v324_v24 = vpop.f32.mrb[1].mxu1 }
 0x1e5   : > { %v325_v25 = vadd.f32 %v324_v24, %v244_v21 }
 0x1e6   : > { %v548_v26 = vmul.f32 -1.442695, %v323_v23 }
 0x1e7   : > { %v549_v27 = vmul.f32 -1.442695, %v325_v25 }
 0x1e8   : > { %613 = vpow2.f32 %v548_v26 }
 0x1e9   : > { %615 = vpow2.f32 %v549_v27 }
 0x1f2   : > { %v614_v28 = vpop.eup %613 }
 0x1f3   : > { %v616_v29 = vpop.eup %615  ;;  %v333_v30 = vadd.f32 1.0, %v614_v28 }
 0x1f4   : > { %v334_v31 = vadd.f32 1.0, %v616_v29 }
 0x1f6   : > { %617 = vrcp.f32 %v334_v31 }
 0x1f7   : > { %619 = vrcp.f32 %v333_v30 }
 0x200   : > { %v618_v32 = vpop.eup %617 }
 0x201   : > { %v620_v33 = vpop.eup %619  ;;  %550 = vmatprep.subr.msk.mxu0 %vm348_vm3, %v618_v32 }
 0x202   : > { %551 = vmatpush1.msk.msra.mxu0 %vm348_vm3, %v620_v33 }
 0x203   : > { %552 = vmatmul.mubr.msk.f32.vlgmr.msra.gmra.mrb[2].mxu0 %vm345_vm4, %v339_v20 }
 0x2d6   : > { %v421_v35 = vpop.f32.mrb[2].mxu0 }
 0x2d7   : > { %v422_v36 = vadd.f32 %v421_v35, %v343_v34  ;;  %v423_v37 = vpop.f32.mrb[3].mxu0 }
 0x2d8   : > { %v424_v38 = vadd.f32 %v423_v37, %v343_v34 }
 0x2d9   : > { %v553_v39 = vmul.f32 -1.442695, %v422_v36 }
 0x2da   : > { %v554_v40 = vmul.f32 -1.442695, %v424_v38 }
 0x2db   : > { %621 = vpow2.f32 %v553_v39 }
 0x2dc   : > { %623 = vpow2.f32 %v554_v40 }
 0x2e5   : > { %v622_v41 = vpop.eup %621 }
 0x2e6   : > { %v624_v42 = vpop.eup %623  ;;  %v432_v43 = vadd.f32 1.0, %v622_v41 }
 0x2e7   : > { %v433_v44 = vadd.f32 1.0, %v624_v42 }
 0x2e8   : > { %625 = vrcp.f32 %v432_v43 }
 0x2e9   : > { %627 = vrcp.f32 %v433_v44 }
 0x2f2   : > { %v626_v50 = vpop.eup %625 }
 0x2f3   : > { %v628_v52 = vpop.eup %627 }
 0x2f4   : > { %v440_v53 = vcombine.low %v626_v50, %v628_v52 }
 0x2f6   : > { %v447_v54 = vrot.slane %v440_v53, %v446_v51 }
 0x2f8   : > { %v454_v55 = vrot.slane %v447_v54, %v446_v51 }
 0x2fa   : > { %460 = vst.msk [vmem:[%s137_s7] sm:$0x3] %vm458_vm5, %v454_v55 }
 0x2fb   : > { %642 = shalt.err (!%p639_p3)
}
 0x2fc   : > { %s643_s25 = scalar_lea.hbm %s778_s17, 32  ;;  %s647_s28 = scalar_lea.hbm %s822_s2, 64 }
 0x2fd   : > { %p644_p4 = scmp.ne.s32.totalorder %s778_s17, %s643_s25  ;;  %p648_p9 = scmp.lt.u32.totalorder %s778_s17, %s822_s2 }
 0x2fe   : > { %p649_p10 = scmp.lt.u32.totalorder %s647_s28, %s643_s25  ;;  %p651_p12 = scmp.lt.u32.totalorder %s643_s25, %s778_s17 }
 0x2ff   : > { %p645_p7 = pnand %p644_p4, %p750_p5 }
 0x300   : > { %p650_p11 = por %p649_p10, %p648_p9 }
 0x301   : > { %p646_p8 = pneg %p645_p7 }
 0x302   : > { %p652_p13 = por %p651_p12, %p650_p11 }
 0x304   : > { %p653_p0 = pnand %p652_p13, %p646_p8 }
 0x306   : > { %656 = shalt.err (!%p653_p0)
}
 0x307   : > { %561 = dma.vmem_to_hbm [thread:$0]  (%p750_p5), %s780_s8, 32, %s778_s17, %s462_s21  }
 0x308 PF: > { %p567_p1 = scmp.ge.s32.totalorder %s691_s12, 2  ;;  %s488_s3 = sand.u32 1, %s679_s9  }
 0x309   : > { %s489_s4 = scalar_lea.sflag [#allocation3], %s488_s3 }
 0x30a   : > { %p564_p2 = pnand %p567_p1, %p754_p6 }
 0x30c   : > { %674 = dma.done.wait (!%p564_p2), %s489_s4, 32  }
 0x30d   : > { %676 = vsyncadd (!%p564_p2), %s489_s4, 4294967264  ;;  %p12_p3 = scmp.ge.s32.totalorder %s737_s15, 4   ;;  %s825_s9 = smov %s683_s10 }
 0x30e   : > { %s826_s10 = smov %s687_s11  ;;  %s827_s11 = smov %s748_s18 }
 0x30f   : > { %s828_s12 = smov %s737_s15  ;;  %14 = sbr.rel (!%p12_p3) target bundleno = 3 (0x3), region = 63 }
 0x316   :  { %494 = vsyncpa [#allocation3], 1 }
 0x317   :  { %496 = vsyncpa [#allocation3 + $0x1], 1 }

</bundles_post_ra>
